<compile_context>
chip_gen: v7x
topology: tpu7x:2x2x1
jax: 0.10.0
libtpu: 0.0.40
codegen_flags: <defaults>
</compile_context>

<pallas_src>
import functools

import jax
import jax.numpy as jnp
from jax.experimental import pallas as pl
from jax.experimental.pallas import tpu as pltpu

_LANE = 128
_SUBLANE = 8
_VMEM_STREAM_BUDGET = 12 * 1024 * 1024  # streamed (double-buffered) x + out blocks


def _round_up(x, m):
    return ((x + m - 1) // m) * m


def _choose_tile_b(B, E):
    """Batch tile sized against the lane-padded VMEM footprint of the streamed blocks."""
    lane_e = _round_up(max(E, _LANE), _LANE)      # x block lanes  (f32, double-buffered)
    lane_c = _LANE                                 # out block lanes (C < 128 -> 128)
    bytes_per_row = 2 * 4 * (lane_e + lane_c)      # 2x for double buffering
    tb = _VMEM_STREAM_BUDGET // bytes_per_row
    tb = max(_SUBLANE, (tb // _SUBLANE) * _SUBLANE)
    # >= 2 grid steps whenever the batch allows it (v7x megacore: both TCs get work).
    tb = min(tb, _round_up(pl.cdiv(B, 2), _SUBLANE))
    tb = min(tb, _round_up(B, _SUBLANE))
    return max(tb, _SUBLANE)


def _vmem_limit_bytes(TB, E):
    lane_e = _round_up(max(E, _LANE), _LANE)
    stream = 2 * 4 * TB * (lane_e + _LANE)              # x + out, double-buffered
    weights = 2 * 4 * _round_up(E, _SUBLANE) * _LANE    # w_pack, double-buffered
    bias = 2 * 4 * _SUBLANE * _LANE                     # b_pack
    total = stream + weights + bias + (1 << 20)         # 1 MiB slack
    return int(min(max(total, 16 << 20), 64 << 20))     # clamp: v5e default .. v7x physical


def _nsrd_kernel(first_prob_col, x_ref, w_ref, b_ref, out_ref):
    """One fused matmul + sigmoid-form 2-class softmax per batch tile.

    x_ref  : [TB, E]
    w_ref  : [E, C]   packed weights  (ps-mean | pr-mean | +(l0-l1) | -(l0-l1))
    b_ref  : [1, C]   packed biases
    out_ref: [TB, C]  packed output   (ps-mean | pr-mean | P(done=0) | P(done=1))
    """
    y = jnp.dot(x_ref[...], w_ref[...],
                preferred_element_type=jnp.float32) + b_ref[...]          # [TB, C]
    # Columns >= first_prob_col hold the antisymmetric done logits; their sigmoid is
    # exactly the 2-class softmax.  One elementwise exp over the tile, one full store.
    sig = 1.0 / (1.0 + jnp.exp(-y))
    col = jax.lax.broadcasted_iota(jnp.int32, y.shape, 1)
    out_ref[...] = jnp.where(col >= first_prob_col, sig, y)


def nsrd_forward(x, params, D, *, use_bf16=False):
    """x: [B, E] float32. params: dict of weights. Returns (ps, pr, pdone)."""
    B, E = x.shape
    w1, b1 = params["w1"], params["b1"]          # [E, 2D], [1, 2D]
    w2, b2 = params["w2"], params["b2"]          # [E+2D, 2], [1, 2]
    w3, b3 = params["w3"], params["b3"]          # [E+2D+2, 2], [1, 2]

    # ---- pre-compose the affine chain once, in XLA --------------------------------
    w2a, w2b = w2[:E], w2[E:]                                # [E,2], [2D,2]
    w3a, w3b, w3c = w3[:E], w3[E:E + 2 * D], w3[E + 2 * D:]  # [E,2],[2D,2],[2,2]

    w_pr = w2a + w1 @ w2b                        # raw_pr = x @ w_pr + b_pr
    b_pr = b2 + b1 @ w2b
    w_done = w3a + w1 @ w3b + w_pr @ w3c         # logits = x @ w_done + b_done
    b_done = b3 + b1 @ w3b + b_pr @ w3c

    # Antisymmetric logit columns: sigmoid of them is the 2-class softmax directly.
    w_diff = w_done[:, :1] - w_done[:, 1:]       # [E, 1]
    b_diff = b_done[:, :1] - b_done[:, 1:]       # [1, 1]

    # packed: [ps mean (D) | pr mean (1) | +(l0-l1) | -(l0-l1)]
    w_pack = jnp.concatenate([w1[:, :D], w_pr[:, :1], w_diff, -w_diff], axis=1)  # [E, D+3]
    b_pack = jnp.concatenate([b1[:, :D], b_pr[:, :1], b_diff, -b_diff], axis=1)  # [1, D+3]
    C = D + 3

    if use_bf16:
        # Halves HBM read bytes (mem-bound kernel); accumulation stays f32 on the MXU.
        x_in = x.astype(jnp.bfloat16)
        w_in = w_pack.astype(jnp.bfloat16)
    else:
        x_in, w_in = x, w_pack

    # ---- batch tiling (no pad-copy of x: Pallas masks the ragged last block) -------
    TB = _choose_tile_b(B, E)
    grid = (pl.cdiv(B, TB),)

    out = pl.pallas_call(
        functools.partial(_nsrd_kernel, D + 1),
        out_shape=jax.ShapeDtypeStruct((B, C), jnp.float32),
        grid=grid,
        in_specs=[
            pl.BlockSpec((TB, E), lambda i: (i, 0)),   # x: tiled over batch (streamed)
            pl.BlockSpec((E, C), lambda i: (0, 0)),    # packed weights: resident
            pl.BlockSpec((1, C), lambda i: (0, 0)),    # packed bias: resident
        ],
        out_specs=pl.BlockSpec((TB, C), lambda i: (i, 0)),
        compiler_params=pltpu.CompilerParams(
            dimension_semantics=("parallel",),          # v7x: shard batch across TCs
            vmem_limit_bytes=_vmem_limit_bytes(TB, E)),
    )(x_in, w_in, b_pack)

    ps = out[:, :D]              # Gaussian mean for next state
    pr = out[:, D:D + 1]         # Gaussian mean for reward
    pdone = out[:, D + 1:]       # softmax probabilities for done
    return ps, pr, pdone


def init_params(key, E, D):
    """Deterministic torch.nn.Linear-style init: U(-1/sqrt(fan_in), 1/sqrt(fan_in))."""
    def linear(k, fan_in, fan_out):
        kw, kb = jax.random.split(k)
        bound = 1.0 / jnp.sqrt(jnp.float32(fan_in))
        w = jax.random.uniform(kw, (fan_in, fan_out), jnp.float32, -bound, bound)
        b = jax.random.uniform(kb, (1, fan_out), jnp.float32, -bound, bound)
        return w, b

    k1, k2, k3 = jax.random.split(key, 3)
    w1, b1 = linear(k1, E, 2 * D)                 # ps:    E        -> 2D
    w2, b2 = linear(k2, E + 2 * D, 2)             # pr:    E+2D     -> 2
    w3, b3 = linear(k3, E + 2 * D + 2, 2)         # pdone: E+2D+2   -> 2
    return {"w1": w1, "b1": b1, "w2": w2, "b2": b2, "w3": w3, "b3": b3}


def reference_forward(x, params, D):
    """Pure-JAX reference (mirrors the PyTorch module's eval forward)."""
    raw_ps = x @ params["w1"] + params["b1"]
    x1 = jnp.concatenate([x, raw_ps], -1)
    raw_pr = x1 @ params["w2"] + params["b2"]
    x2 = jnp.concatenate([x1, raw_pr], -1)
    logits = x2 @ params["w3"] + params["b3"]
    return raw_ps[:, :D], raw_pr[:, :1], jax.nn.softmax(logits, axis=-1)


if __name__ == "__main__":
    B, E, D = 8, 32, 4   # batch, embedding_size, next-state dim

    key = jax.random.PRNGKey(0)
    kx, kp = jax.random.split(key)
    x = jax.random.normal(kx, (B, E), jnp.float32)
    params = init_params(kp, E, D)

    ps, pr, pdone = nsrd_forward(x, params, D)
    jax.block_until_ready((ps, pr, pdone))

    ps_ref, pr_ref, pdone_ref = reference_forward(x, params, D)
    assert ps.shape == (B, D) and pr.shape == (B, 1) and pdone.shape == (B, 2)
    assert jnp.allclose(ps, ps_ref, atol=1e-5, rtol=1e-5)
    assert jnp.allclose(pr, pr_ref, atol=1e-5, rtol=1e-5)
    assert jnp.allclose(pdone, pdone_ref, atol=1e-5, rtol=1e-5)

    print("KERNEL_OK")
</pallas_src>

<mosaic_0001>
module attributes {stable_mosaic.version = 11 : i64} {
  func.func @_nsrd_kernel(%arg0: i32, %arg1: memref<8x32xf32, #tpu.memory_space<vmem>>, %arg2: memref<32x7xf32, #tpu.memory_space<vmem>>, %arg3: memref<1x7xf32, #tpu.memory_space<vmem>>, %arg4: memref<8x7xf32, #tpu.memory_space<vmem>>) attributes {dimension_semantics = [#tpu.dimension_semantics<parallel>], iteration_bounds = array<i64: 1>, scalar_prefetch = 0 : i64, scratch_operands = 0 : i64, tpu.core_type = #tpu.core_type<tc>, window_params = [{transform_indices = @transform_0, window_bounds = array<i64: 8, 32>}, {pipeline_mode = #tpu.pipeline_mode<synchronous>, transform_indices = @transform_1, window_bounds = array<i64: 32, 7>}, {pipeline_mode = #tpu.pipeline_mode<synchronous>, transform_indices = @transform_2, window_bounds = array<i64: 1, 7>}, {transform_indices = @transform_3, window_bounds = array<i64: 8, 7>}]} {
    %c0 = arith.constant 0 : index
    %c0_0 = arith.constant 0 : index
    %0 = vector.load %arg1[%c0, %c0_0] : memref<8x32xf32, #tpu.memory_space<vmem>>, vector<8x32xf32>
    %c0_1 = arith.constant 0 : index
    %c0_2 = arith.constant 0 : index
    %1 = vector.load %arg2[%c0_1, %c0_2] : memref<32x7xf32, #tpu.memory_space<vmem>>, vector<32x7xf32>
    %cst = arith.constant dense<0.000000e+00> : vector<8x7xf32>
    %2 = tpu.matmul %0, %1, %cst {dimension_numbers = #tpu.dot_dimension_numbers<[1], [0], [0], [1], [0, 0, 1, 1], [], []>} : vector<8x32xf32>, vector<32x7xf32>, vector<8x7xf32> -> vector<8x7xf32>
    %c0_3 = arith.constant 0 : index
    %c0_4 = arith.constant 0 : index
    %3 = vector.load %arg3[%c0_3, %c0_4] : memref<1x7xf32, #tpu.memory_space<vmem>>, vector<1x7xf32>
    %4 = vector.broadcast %3 : vector<1x7xf32> to vector<8x7xf32>
    %5 = arith.addf %2, %4 : vector<8x7xf32>
    %cst_5 = arith.constant 0.000000e+00 : f32
    %6 = vector.broadcast %cst_5 : f32 to vector<8x7xf32>
    %7 = arith.subf %6, %5 : vector<8x7xf32>
    %8 = math.exp %7 : vector<8x7xf32>
    %cst_6 = arith.constant 1.000000e+00 : f32
    %9 = vector.broadcast %cst_6 : f32 to vector<8x7xf32>
    %10 = arith.addf %9, %8 : vector<8x7xf32>
    %cst_7 = arith.constant 1.000000e+00 : f32
    %11 = vector.broadcast %cst_7 : f32 to vector<8x7xf32>
    %12 = arith.divf %11, %10 : vector<8x7xf32>
    %13 = tpu.iota {dimensions = array<i32: 1>} : vector<8x7xi32>
    %c5_i32 = arith.constant 5 : i32
    %14 = vector.broadcast %c5_i32 : i32 to vector<8x7xi32>
    %15 = arith.cmpi sge, %13, %14 : vector<8x7xi32>
    %16 = arith.select %15, %12, %5 : vector<8x7xi1>, vector<8x7xf32>
    %c0_8 = arith.constant 0 : index
    %c0_9 = arith.constant 0 : index
    %17 = vector.load %arg4[%c0_8, %c0_9] : memref<8x7xf32, #tpu.memory_space<vmem>>, vector<8x7xf32>
    tpu.vector_store %arg4[%c0_8, %c0_9], %16 {strides = array<i32>} : memref<8x7xf32, #tpu.memory_space<vmem>>, vector<8x7xf32>,
    return
  }
  func.func @transform_0(%arg0: i32) -> (i32, i32) {
    %c0_i32 = arith.constant 0 : i32
    %c0_i32_0 = arith.constant 0 : i32
    return %arg0, %c0_i32 : i32, i32
  }
  func.func @transform_1(%arg0: i32) -> (i32, i32) {
    %c0_i32 = arith.constant 0 : i32
    %c0_i32_0 = arith.constant 0 : i32
    %c0_i32_1 = arith.constant 0 : i32
    return %c0_i32, %c0_i32_0 : i32, i32
  }
  func.func @transform_2(%arg0: i32) -> (i32, i32) {
    %c0_i32 = arith.constant 0 : i32
    %c0_i32_0 = arith.constant 0 : i32
    %c0_i32_1 = arith.constant 0 : i32
    return %c0_i32, %c0_i32_0 : i32, i32
  }
  func.func @transform_3(%arg0: i32) -> (i32, i32) {
    %c0_i32 = arith.constant 0 : i32
    %c0_i32_0 = arith.constant 0 : i32
    return %arg0, %c0_i32 : i32, i32
  }
}

</mosaic_0001>

<bundles_post_ra>
// kernel: tpu_custom_call.1
= control target key start
LH: loop header
LB: loop body
LE: loop exit
PB: predicated region body
PF: predicated region fallthrough
CT: control target
= control target key end

     0   :  { %v183_v3 = vmov 0.0|0.0   ;;  %vm184_vm0 = vmmov 0   ;;  %v185_v6 = vmov 0.0   ;;  %s237_s0 = inlined_call_operand.vmem [shape: f32[8,32], index: 0, kind: input, shape index: {}]   ;;  %s238_s1 = inlined_call_operand.vmem [shape: f32[32,7], index: 1, kind: input, shape index: {}]   ;;  %s239_s2 = inlined_call_operand.vmem [shape: f32[1,7], index: 2, kind: input, shape index: {}]   ;;  %s240_s3 = inlined_call_operand.hbm [shape: f32[8,7], index: 3, kind: output, shape index: {}]  }
   0x1   :  { %v16_v0 = vld [vmem:[%s238_s1] sm:$0xff]  ;;  %v17_v1 = vld [vmem:[%s238_s1 + $0x8] sm:$0xff]  ;;  %v18_v2 = vld [vmem:[%s238_s1 + $0x10] sm:$0xff]  ;;  %145 = vmatprep.subr.bf16.mxu0 %v183_v3  ;;  %142 = vmatprep.mubr.msk.f32.mxu0 %vm184_vm0, %v185_v6 }
   0x2   :  { %v146_v4 = vpack.c.bf16 %v17_v1, %v16_v0  ;;  %v19_v5 = vld [vmem:[%s238_s1 + $0x18] sm:$0xff] }
   0x3   :  { %8 = vsyncpa [#allocation3], 0  ;;  %v149_v7 = vpack.c.bf16 %v19_v5, %v18_v2  ;;  %v15_v8 = vld [vmem:[%s237_s0] sm:$0xff]  ;;  %vm27_vm1 = vcmask 261120   ;;  %v107_v17 = vlaneseq  ;;  %s186_s1 = smov [#allocation2]   ;;  %vm111_vm3 = vcmask 56320  }
   0x4   :  { %147 = vmatpush3.bf16.msra.mxu0 %v146_v4  ;;  %v127_v9 = vld [vmem:[%s239_s2] ss:$0 sm:$0xff]  ;;  %s119_s24 = sshll.u32 %s186_s1, 4  ;;  %s120_s24 = int_to_ptr.vmem [resolvable:$true] %s119_s24 }
   0x5   :  { %148 = vmatprep.subr.bf16.mxu0 %v183_v3  ;;  %v108_v18 = vand.u32 127, %v107_v17  ;;  %s159_s0 = scalar_lea.vmem %s120_s24, 128  ;;  %p164_p1 = scmp.lt.s32.totalorder %s120_s24, %s120_s24 }
   0x6   :  { %p160_p0 = scmp.ne.s32.totalorder %s120_s24, %s159_s0  ;;  %p165_p2 = scmp.lt.s32.totalorder %s159_s0, %s159_s0 }
   0x7   :  { %vm109_vm2 = vcmp.ge.s32.totalorder %v108_v18, 5 }
   0x8   :  { %150 = vmatpush3.bf16.msra.mxu0 %v149_v7  ;;  %p166_p3 = por %p165_p2, %p164_p1 }
   0xa   :  { %p167_p4 = pnand %p166_p3, %p160_p0 }
   0xb   :  { %143 = vmatmul.mubr.msk.f32.vlgmr.msra.gmra.mrb[0].mxu0 %vm27_vm1, %v15_v8 }
  0xde   :  { %v97_v10 = vpop.f32.mrb[0].mxu0 }
  0xdf   :  { %v98_v11 = vadd.f32 %v127_v9, %v97_v10  ;;  %v144_v12 = vpop.f32.mrb[1].mxu0 }
  0xe1   :  { %v101_v13 = vsub.f32 0.0, %v98_v11 }
  0xe3   :  { %v102_v14 = vmul.f32 1.442695, %v101_v13 }
  0xe5   :  { %155 = vpow2.f32 %v102_v14 }
  0xef   :  { %v156_v15 = vpop.eup %155 }
  0xf0   :  { %v104_v16 = vadd.f32 1.0, %v156_v15 }
  0xf2   :  { %157 = vrcp.f32 %v104_v16 }
  0xfc   :  { %v158_v19 = vpop.eup %157 }
  0xfd   :  { %v110_v20 = vsel %vm109_vm2, %v158_v19, %v98_v11 }
  0xfe   :  { %112 = vst.msk [vmem:[#allocation2] sm:$0xff] %vm111_vm3, %v110_v20 }
  0xff   :  { %170 = shalt.err (!%p167_p4)
}
 0x100   :  { %s171_s26 = scalar_lea.hbm %s240_s3, 128 }
 0x101   :  { %p172_p5 = scmp.ne.s32.totalorder %s240_s3, %s171_s26  ;;  %p175_p6 = scmp.lt.u32.totalorder %s171_s26, %s240_s3 }
 0x103   :  { %p177_p7 = pnand %p175_p6, %p172_p5 }
 0x105   :  { %180 = shalt.err (!%p177_p7)
}
 0x106   :  { %122 = dma.vmem_to_hbm [thread:$0]  %s120_s24, 128, %s240_s3, [#allocation3]  }
 0x107   :  { %181 = dma.done.wait [#allocation3], 128  }
 0x108   :  { %182 = vsyncadd [#allocation3], 4294967168 }
 0x109   :  { %126 = vsyncpa [#allocation3], 1 }

</bundles_post_ra>
